<compile_context>
chip_gen: v7x
topology: tpu7x:2x2x1
jax: 0.10.0
libtpu: 0.0.40
codegen_flags: <defaults>
</compile_context>

<pallas_src>
import functools

import jax
import jax.numpy as jnp
from jax.experimental import pallas as pl
from jax.experimental.pallas import tpu as pltpu


def _contrastive_loss_kernel(o1_ref, o2_ref, lab_ref, out_ref, *,
                             margin, eps, batch, tile):
    i = pl.program_id(0)

    @pl.when(i == 0)
    def _():
        out_ref[...] = jnp.zeros_like(out_ref)

    x1 = o1_ref[...].astype(jnp.float32)          # (TB, D)
    x2 = o2_ref[...].astype(jnp.float32)          # (TB, D)
    lab = lab_ref[...].astype(jnp.float32)        # (TB, 1)

    # Row-wise reductions only; no (TB, D) normalized / diff temporaries.
    s1 = jnp.sum(x1 * x1, axis=1, keepdims=True)   # (TB, 1)
    s2 = jnp.sum(x2 * x2, axis=1, keepdims=True)   # (TB, 1)
    dot = jnp.sum(x1 * x2, axis=1, keepdims=True)  # (TB, 1)

    # F.normalize(p=2, dim=1): x / max(||x||, 1e-12); note
    # max(sqrt(s), 1e-12) == sqrt(max(s, 1e-24)), so rsqrt(max(s, 1e-24))
    # reproduces the clamp exactly (zero rows -> zero vectors).
    inv1 = jax.lax.rsqrt(jnp.maximum(s1, 1e-24))
    inv2 = jax.lax.rsqrt(jnp.maximum(s2, 1e-24))

    n1_sq = s1 * inv1 * inv1                       # == ||n1||^2
    n2_sq = s2 * inv2 * inv2
    cos = dot * inv1 * inv2

    dist_sq = jnp.maximum(n1_sq + n2_sq - 2.0 * cos, 0.0)  # clamp fp negatives
    dist = jnp.sqrt(dist_sq)                                # (TB, 1)

    hinge = jnp.maximum(margin - (dist + eps), 0.0)         # relu(margin-(d+eps))
    loss = 0.5 * lab * dist_sq + 0.5 * (1.0 - lab) * hinge * hinge  # (TB, 1)

    # Mask padded rows of the (possibly partial) last tile before reducing.
    row = jax.lax.broadcasted_iota(jnp.int32, loss.shape, 0) + i * tile
    loss = jnp.where(row < batch, loss, 0.0)

    out_ref[...] = out_ref[...] + jnp.sum(loss)

    @pl.when(i == pl.num_programs(0) - 1)
    def _():
        out_ref[...] = out_ref[...] * (1.0 / batch)


def _pick_tile_rows(B, D, itemsize):
    # Target ~2 MiB per input buffer.
    target_rows = max(8, (2 * 1024 * 1024) // max(1, D * itemsize))
    if B <= target_rows:
        return B                       # single full-extent block
    return min(1024, max(8, (target_rows // 8) * 8))


def contrastive_loss(output1, output2, label, *, margin=2.0, eps=1e-9,
                     tile_rows=None):
    """Pallas implementation of ContrastiveLoss.forward.

    output1, output2: (B, D) float arrays (f32 or bf16).
    label:            (B,)  array of 0/1 (any numeric dtype).
    Returns a scalar f32 loss.
    """
    B, D = output1.shape
    label2d = label.astype(jnp.float32).reshape(B, 1)

    itemsize = max(jnp.dtype(output1.dtype).itemsize,
                   jnp.dtype(output2.dtype).itemsize)
    if tile_rows is None:
        TB = _pick_tile_rows(B, D, itemsize)
    else:
        TB = min(int(tile_rows), B)
        if TB < B:
            # Sublane-divisibility required for non-full-extent blocks.
            TB = max(8, (TB // 8) * 8)
    num_steps = pl.cdiv(B, TB)

    kernel = functools.partial(
        _contrastive_loss_kernel,
        margin=float(margin), eps=float(eps), batch=B, tile=TB)

    bytes_in = (output1.size * jnp.dtype(output1.dtype).itemsize
                + output2.size * jnp.dtype(output2.dtype).itemsize
                + label2d.size * 4)
    cost = pl.CostEstimate(flops=8 * B * D,
                           transcendentals=3 * B,
                           bytes_accessed=bytes_in + 4)

    out = pl.pallas_call(
        kernel,
        out_shape=jax.ShapeDtypeStruct((1, 1), jnp.float32),
        grid_spec=pltpu.PrefetchScalarGridSpec(
            num_scalar_prefetch=0,
            grid=(num_steps,),
            in_specs=[
                pl.BlockSpec((TB, D), lambda i: (i, 0)),
                pl.BlockSpec((TB, D), lambda i: (i, 0)),
                pl.BlockSpec((TB, 1), lambda i: (i, 0)),
            ],
            out_specs=pl.BlockSpec((1, 1), lambda i: (0, 0)),
        ),
        compiler_params=pltpu.CompilerParams(
            dimension_semantics=("arbitrary",)),
        cost_estimate=cost,
    )(output1, output2, label2d)
    return out[0, 0]


def _reference(output1, output2, label, margin=2.0, eps=1e-9):
    # Pure-JAX reference mirroring the PyTorch module, for sanity checking.
    def normalize(x):
        return x / jnp.maximum(
            jnp.sqrt(jnp.sum(x * x, axis=1, keepdims=True)), 1e-12)
    d = jnp.sqrt(jnp.sum((normalize(output2) - normalize(output1)) ** 2, axis=1))
    lab = label.astype(jnp.float32)
    loss = 0.5 * lab * d ** 2 + 0.5 * (1.0 - lab) * jnp.maximum(
        margin - (d + eps), 0.0) ** 2
    return jnp.mean(loss)


if __name__ == "__main__":
    key = jax.random.PRNGKey(0)
    k1, k2, k3 = jax.random.split(key, 3)

    # Test 1: small, single full-extent block.
    B, D = 8, 32
    output1 = jax.random.normal(k1, (B, D), dtype=jnp.float32)
    output2 = jax.random.normal(k2, (B, D), dtype=jnp.float32)
    label = jax.random.bernoulli(k3, p=0.5, shape=(B,)).astype(jnp.int32)

    loss = contrastive_loss(output1, output2, label)
    jax.block_until_ready(loss)
    ref = _reference(output1, output2, label)
    assert jnp.allclose(loss, ref, atol=1e-5, rtol=1e-5), (loss, ref)

    # Test 2: exercise batch tiling + partial-tile masking (B=20, TB=8 -> 3 tiles).
    k4, k5, k6 = jax.random.split(jax.random.PRNGKey(1), 3)
    B2, D2 = 20, 32
    o1b = jax.random.normal(k4, (B2, D2), dtype=jnp.float32)
    o2b = jax.random.normal(k5, (B2, D2), dtype=jnp.float32)
    labb = jax.random.bernoulli(k6, p=0.5, shape=(B2,)).astype(jnp.int32)

    loss2 = contrastive_loss(o1b, o2b, labb, tile_rows=8)
    jax.block_until_ready(loss2)
    ref2 = _reference(o1b, o2b, labb)
    assert jnp.allclose(loss2, ref2, atol=1e-5, rtol=1e-5), (loss2, ref2)

    print("KERNEL_OK")
</pallas_src>

<mosaic_0001>
module attributes {stable_mosaic.version = 11 : i64} {
  func.func @_contrastive_loss_kernel(%arg0: i32, %arg1: memref<8x32xf32, #tpu.memory_space<vmem>>, %arg2: memref<8x32xf32, #tpu.memory_space<vmem>>, %arg3: memref<8x1xf32, #tpu.memory_space<vmem>>, %arg4: memref<1x1xf32, #tpu.memory_space<vmem>>) attributes {dimension_semantics = [#tpu.dimension_semantics<arbitrary>], iteration_bounds = array<i64: 1>, scalar_prefetch = 0 : i64, scratch_operands = 0 : i64, tpu.core_type = #tpu.core_type<tc>, window_params = [{transform_indices = @transform_0, window_bounds = array<i64: 8, 32>}, {transform_indices = @transform_1, window_bounds = array<i64: 8, 32>}, {transform_indices = @transform_2, window_bounds = array<i64: 8, 1>}, {pipeline_mode = #tpu.pipeline_mode<synchronous>, transform_indices = @transform_3, window_bounds = array<i64: 1, 1>}]} {
    %c0_i32 = arith.constant 0 : i32
    %0 = arith.cmpi eq, %arg0, %c0_i32 : i32
    %1 = arith.extui %0 : i1 to i32
    %c0_i32_0 = arith.constant 0 : i32
    %2 = arith.cmpi ne, %1, %c0_i32_0 : i32
    scf.if %2 {
      %cst_27 = arith.constant 0.000000e+00 : f32
      %69 = vector.broadcast %cst_27 : f32 to vector<1x1xf32>
      %c0_28 = arith.constant 0 : index
      %c0_29 = arith.constant 0 : index
      %70 = vector.load %arg4[%c0_28, %c0_29] : memref<1x1xf32, #tpu.memory_space<vmem>>, vector<1x1xf32>
      tpu.vector_store %arg4[%c0_28, %c0_29], %69 {strides = array<i32>} : memref<1x1xf32, #tpu.memory_space<vmem>>, vector<1x1xf32>,
    } else {
    }
    %c0 = arith.constant 0 : index
    %c0_1 = arith.constant 0 : index
    %3 = vector.load %arg1[%c0, %c0_1] : memref<8x32xf32, #tpu.memory_space<vmem>>, vector<8x32xf32>
    %c0_2 = arith.constant 0 : index
    %c0_3 = arith.constant 0 : index
    %4 = vector.load %arg2[%c0_2, %c0_3] : memref<8x32xf32, #tpu.memory_space<vmem>>, vector<8x32xf32>
    %c0_4 = arith.constant 0 : index
    %c0_5 = arith.constant 0 : index
    %5 = vector.load %arg3[%c0_4, %c0_5] : memref<8x1xf32, #tpu.memory_space<vmem>>, vector<8x1xf32>
    %6 = arith.mulf %3, %3 : vector<8x32xf32>
    %cst = arith.constant dense<0.000000e+00> : vector<8xf32>
    %7 = vector.multi_reduction <add>, %6, %cst [1] : vector<8x32xf32> to vector<8xf32>
    %8 = vector.shape_cast %7 : vector<8xf32> to vector<8x1xf32>
    %9 = arith.mulf %4, %4 : vector<8x32xf32>
    %cst_6 = arith.constant dense<0.000000e+00> : vector<8xf32>
    %10 = vector.multi_reduction <add>, %9, %cst_6 [1] : vector<8x32xf32> to vector<8xf32>
    %11 = vector.shape_cast %10 : vector<8xf32> to vector<8x1xf32>
    %12 = arith.mulf %3, %4 : vector<8x32xf32>
    %cst_7 = arith.constant dense<0.000000e+00> : vector<8xf32>
    %13 = vector.multi_reduction <add>, %12, %cst_7 [1] : vector<8x32xf32> to vector<8xf32>
    %14 = vector.shape_cast %13 : vector<8xf32> to vector<8x1xf32>
    %cst_8 = arith.constant 1.000000e-24 : f32
    %15 = vector.broadcast %cst_8 : f32 to vector<8x1xf32>
    %16 = arith.maximumf %8, %15 : vector<8x1xf32>
    %17 = math.rsqrt %16 : vector<8x1xf32>
    %cst_9 = arith.constant 1.000000e-24 : f32
    %18 = vector.broadcast %cst_9 : f32 to vector<8x1xf32>
    %19 = arith.maximumf %11, %18 : vector<8x1xf32>
    %20 = math.rsqrt %19 : vector<8x1xf32>
    %21 = arith.mulf %8, %17 : vector<8x1xf32>
    %22 = arith.mulf %21, %17 : vector<8x1xf32>
    %23 = arith.mulf %11, %20 : vector<8x1xf32>
    %24 = arith.mulf %23, %20 : vector<8x1xf32>
    %25 = arith.mulf %14, %17 : vector<8x1xf32>
    %26 = arith.mulf %25, %20 : vector<8x1xf32>
    %27 = arith.addf %22, %24 : vector<8x1xf32>
    %cst_10 = arith.constant 2.000000e+00 : f32
    %28 = vector.broadcast %cst_10 : f32 to vector<8x1xf32>
    %29 = arith.mulf %28, %26 : vector<8x1xf32>
    %30 = arith.subf %27, %29 : vector<8x1xf32>
    %cst_11 = arith.constant 0.000000e+00 : f32
    %31 = vector.broadcast %cst_11 : f32 to vector<8x1xf32>
    %32 = arith.maximumf %30, %31 : vector<8x1xf32>
    %33 = math.sqrt %32 : vector<8x1xf32>
    %cst_12 = arith.constant 9.99999971E-10 : f32
    %34 = vector.broadcast %cst_12 : f32 to vector<8x1xf32>
    %35 = arith.addf %33, %34 : vector<8x1xf32>
    %cst_13 = arith.constant 2.000000e+00 : f32
    %36 = vector.broadcast %cst_13 : f32 to vector<8x1xf32>
    %37 = arith.subf %36, %35 : vector<8x1xf32>
    %cst_14 = arith.constant 0.000000e+00 : f32
    %38 = vector.broadcast %cst_14 : f32 to vector<8x1xf32>
    %39 = arith.maximumf %37, %38 : vector<8x1xf32>
    %cst_15 = arith.constant 5.000000e-01 : f32
    %40 = vector.broadcast %cst_15 : f32 to vector<8x1xf32>
    %41 = arith.mulf %40, %5 : vector<8x1xf32>
    %42 = arith.mulf %41, %32 : vector<8x1xf32>
    %cst_16 = arith.constant 1.000000e+00 : f32
    %43 = vector.broadcast %cst_16 : f32 to vector<8x1xf32>
    %44 = arith.subf %43, %5 : vector<8x1xf32>
    %cst_17 = arith.constant 5.000000e-01 : f32
    %45 = vector.broadcast %cst_17 : f32 to vector<8x1xf32>
    %46 = arith.mulf %45, %44 : vector<8x1xf32>
    %47 = arith.mulf %46, %39 : vector<8x1xf32>
    %48 = arith.mulf %47, %39 : vector<8x1xf32>
    %49 = arith.addf %42, %48 : vector<8x1xf32>
    %50 = tpu.iota {dimensions = array<i32: 0>} : vector<8x1xi32>
    %c8_i32 = arith.constant 8 : i32
    %51 = arith.muli %arg0, %c8_i32 : i32
    %52 = vector.broadcast %51 : i32 to vector<8x1xi32>
    %53 = arith.addi %50, %52 : vector<8x1xi32>
    %c8_i32_18 = arith.constant 8 : i32
    %54 = vector.broadcast %c8_i32_18 : i32 to vector<8x1xi32>
    %55 = arith.cmpi slt, %53, %54 : vector<8x1xi32>
    %cst_19 = arith.constant 0.000000e+00 : f32
    %56 = vector.broadcast %cst_19 : f32 to vector<8x1xf32>
    %57 = arith.select %55, %49, %56 : vector<8x1xi1>, vector<8x1xf32>
    %c0_20 = arith.constant 0 : index
    %c0_21 = arith.constant 0 : index
    %58 = vector.load %arg4[%c0_20, %c0_21] : memref<1x1xf32, #tpu.memory_space<vmem>>, vector<1x1xf32>
    %59 = vector.shape_cast %57 : vector<8x1xf32> to vector<1x8x1xf32>
    %cst_22 = arith.constant dense<0.000000e+00> : vector<1xf32>
    %60 = vector.multi_reduction <add>, %59, %cst_22 [1, 2] : vector<1x8x1xf32> to vector<1xf32>
    %61 = vector.shape_cast %60 : vector<1xf32> to vector<1x1x1xf32>
    %62 = vector.extract %61[0, 0, 0] : f32 from vector<1x1x1xf32>
    %63 = vector.broadcast %62 : f32 to vector<1x1xf32>
    %64 = arith.addf %58, %63 : vector<1x1xf32>
    %c0_23 = arith.constant 0 : index
    %c0_24 = arith.constant 0 : index
    %65 = vector.load %arg4[%c0_23, %c0_24] : memref<1x1xf32, #tpu.memory_space<vmem>>, vector<1x1xf32>
    tpu.vector_store %arg4[%c0_23, %c0_24], %64 {strides = array<i32>} : memref<1x1xf32, #tpu.memory_space<vmem>>, vector<1x1xf32>,
    %c0_i32_25 = arith.constant 0 : i32
    %66 = arith.cmpi eq, %arg0, %c0_i32_25 : i32
    %67 = arith.extui %66 : i1 to i32
    %c0_i32_26 = arith.constant 0 : i32
    %68 = arith.cmpi ne, %67, %c0_i32_26 : i32
    scf.if %68 {
      %c0_27 = arith.constant 0 : index
      %c0_28 = arith.constant 0 : index
      %69 = vector.load %arg4[%c0_27, %c0_28] : memref<1x1xf32, #tpu.memory_space<vmem>>, vector<1x1xf32>
      %cst_29 = arith.constant 1.250000e-01 : f32
      %70 = vector.broadcast %cst_29 : f32 to vector<1x1xf32>
      %71 = arith.mulf %69, %70 : vector<1x1xf32>
      %c0_30 = arith.constant 0 : index
      %c0_31 = arith.constant 0 : index
      %72 = vector.load %arg4[%c0_30, %c0_31] : memref<1x1xf32, #tpu.memory_space<vmem>>, vector<1x1xf32>
      tpu.vector_store %arg4[%c0_30, %c0_31], %71 {strides = array<i32>} : memref<1x1xf32, #tpu.memory_space<vmem>>, vector<1x1xf32>,
    } else {
    }
    return
  }
  func.func @transform_0(%arg0: i32) -> (i32, i32) {
    %c0_i32 = arith.constant 0 : i32
    %c0_i32_0 = arith.constant 0 : i32
    return %arg0, %c0_i32 : i32, i32
  }
  func.func @transform_1(%arg0: i32) -> (i32, i32) {
    %c0_i32 = arith.constant 0 : i32
    %c0_i32_0 = arith.constant 0 : i32
    return %arg0, %c0_i32 : i32, i32
  }
  func.func @transform_2(%arg0: i32) -> (i32, i32) {
    %c0_i32 = arith.constant 0 : i32
    %c0_i32_0 = arith.constant 0 : i32
    return %arg0, %c0_i32 : i32, i32
  }
  func.func @transform_3(%arg0: i32) -> (i32, i32) {
    %c0_i32 = arith.constant 0 : i32
    %c0_i32_0 = arith.constant 0 : i32
    %c0_i32_1 = arith.constant 0 : i32
    return %c0_i32, %c0_i32_0 : i32, i32
  }
}

</mosaic_0001>

<bundles_post_ra>
// kernel: tpu_custom_call.1
= control target key start
LH: loop header
LB: loop body
LE: loop exit
PB: predicated region body
PF: predicated region fallthrough
CT: control target
= control target key end

     0   :  { %8 = vsyncpa [#allocation3], 0  ;;  %s239_s0 = inlined_call_operand.vmem [shape: f32[8,32], index: 0, kind: input, shape index: {}]   ;;  %s240_s1 = inlined_call_operand.hbm [shape: f32[8,32], index: 1, kind: input, shape index: {}]   ;;  %s241_s2 = inlined_call_operand.vmem [shape: f32[8,1], index: 2, kind: input, shape index: {}]   ;;  %s242_s3 = inlined_call_operand.hbm [shape: f32[1,1], index: 3, kind: output, shape index: {}]  }
   0x1   :  { %9 = vsyncpa [#allocation4], 0  ;;  %s183_s12 = smov [#allocation2]   ;;  %s135_s16 = scalar_lea.hbm %s240_s1, 128 }
   0x2   :  { %s18_s13 = sshll.u32 %s183_s12, 4  ;;  %p136_p0 = scmp.ne.s32.totalorder %s240_s1, %s135_s16  ;;  %s19_s13 = int_to_ptr.vmem [resolvable:$true] %s18_s13 }
   0x3   :  { %p139_p1 = scmp.lt.u32.totalorder %s135_s16, %s240_s1 }
   0x5   :  { %p141_p2 = pnand %p139_p1, %p136_p0 }
   0x7   :  { %144 = shalt.err (!%p141_p2)
}
   0x8   :  { %s145_s21 = scalar_lea.vmem %s19_s13, 128  ;;  %p150_p4 = scmp.lt.s32.totalorder %s19_s13, %s19_s13 }
   0x9   :  { %p146_p3 = scmp.ne.s32.totalorder %s19_s13, %s145_s21  ;;  %p151_p5 = scmp.lt.s32.totalorder %s145_s21, %s145_s21 }
   0xb   :  { %p152_p6 = por %p151_p5, %p150_p4 }
   0xd   :  { %p153_p7 = pnand %p152_p6, %p146_p3 }
   0xf   :  { %156 = shalt.err (!%p153_p7)
}
  0x10   :  { %21 = dma.hbm_to_vmem [thread:$0]  %s240_s1, 128, %s19_s13, [#allocation3]  }
  0x11   :  { %179 = dma.done.wait [#allocation3], 128  }
  0x12   :  { %180 = vsyncadd [#allocation3], 4294967168  ;;  %v33_v0 = vld [vmem:[%s239_s0] sm:$0xff]  ;;  %vm37_vm0 = vcmask 261120   ;;  %vm88_vm3 = vcmask 7168   ;;  %vm31_vm4 = vcmask 0  }
  0x13   :  { %v34_v1 = vld [vmem:[#allocation2] sm:$0xff]  ;;  %v36_v2 = vmul.f32 %v33_v0, %v33_v0  ;;  %v184_v42 = vmov 0.0   ;;  %s185_s26 = smov [#allocation5]  }
  0x14   :  { %v41_v3 = vmul.f32 %v34_v1, %v34_v1  ;;  %v45_v4 = vmul.f32 %v34_v1, %v33_v0  ;;  %v35_v27 = vld [vmem:[%s241_s2] sm:$0xff]  ;;  %32 = vst.msk [vmem:[#allocation5] sm:$0x1] %vm31_vm4, %v184_v42  ;;  %s115_s27 = sshll.u32 %s185_s26, 4  ;;  %s116_s27 = int_to_ptr.vmem [resolvable:$true] %s115_s27 }
  0x15   :  { %v38_v5 = vsel %vm37_vm0, %v36_v2, 0.0  ;;  %v75_v30 = vsub.f32 1.0, %v35_v27  ;;  %v73_v36 = vmul.f32 0.5, %v35_v27  ;;  %s157_s28 = scalar_lea.vmem %s116_s27, 16  ;;  %s161_s29 = scalar_lea.vmem %s116_s27, 32 }
  0x16   :  { %v46_v6 = vsel %vm37_vm0, %v45_v4, 0.0  ;;  %39 = vadd.xlane.f32.xlu0 %v38_v5  ;;  %v42_v7 = vsel %vm37_vm0, %v41_v3, 0.0  ;;  %p158_p8 = scmp.ne.s32.totalorder %s116_s27, %s157_s28  ;;  %p162_p9 = scmp.lt.s32.totalorder %s116_s27, %s116_s27 }
  0x17   :  { %47 = vadd.xlane.f32.xlu1 %v46_v6  ;;  %v76_v34 = vmul.f32 0.5, %v75_v30  ;;  %p163_p10 = scmp.lt.s32.totalorder %s161_s29, %s157_s28 }
  0x19   :  { %p164_p11 = por %p163_p10, %p162_p9 }
  0x1a   :  { %43 = vadd.xlane.f32.xlu0 %v42_v7 }
  0x1b   :  { %v87_v50 = vld [vmem:[#allocation5] sm:$0x1]  ;;  %p165_p12 = pnand %p164_p11, %p158_p8 }
  0xa3   :  { %v40_v8 = vpop.xlane.xlu0 %39 }
  0xa4   :  { %v49_v9 = vmax.f32 %v40_v8, 1e-24  ;;  %v48_v13 = vpop.xlane.xlu1 %47 }
  0xa6   :  { %129 = vrsqrt.f32 %v49_v9 }
  0xa7   :  { %v44_v10 = vpop.xlane.xlu0 %43 }
  0xa8   :  { %v51_v11 = vmax.f32 %v44_v10, 1e-24 }
  0xaa   :  { %131 = vrsqrt.f32 %v51_v11 }
  0xb0   :  { %v130_v12 = vpop.eup %129 }
  0xb1   :  { %v53_v14 = vmul.f32 %v130_v12, %v40_v8  ;;  %v57_v15 = vmul.f32 %v130_v12, %v48_v13 }
  0xb3   :  { %v54_v19 = vmul.f32 %v130_v12, %v53_v14 }
  0xb4   :  { %v132_v16 = vpop.eup %131 }
  0xb5   :  { %v55_v17 = vmul.f32 %v132_v16, %v44_v10  ;;  %v58_v18 = vmul.f32 %v132_v16, %v57_v15 }
  0xb7   :  { %v56_v20 = vmul.f32 %v132_v16, %v55_v17  ;;  %v60_v22 = vmul.f32 2.0, %v58_v18 }
  0xb9   :  { %v59_v21 = vadd.f32 %v56_v20, %v54_v19 }
  0xbb   :  { %v61_v23 = vsub.f32 %v59_v21, %v60_v22 }
  0xbd   :  { %v62_v24 = vmax.f32 %v61_v23, 0.0 }
  0xbf   :  { %133 = vrsqrt.f32 %v62_v24  ;;  %vm65_vm1 = vcmp.eq.f32.partialorder %v62_v24, inf  ;;  %v68_v28 = vand.u32 2147483648, %v62_v24  ;;  %vm67_vm2 = vcmp.eq.f32.partialorder %v62_v24, 0.0 }
  0xc0   :  { %v74_v38 = vmul.f32 %v73_v36, %v62_v24 }
  0xc9   :  { %v134_v25 = vpop.eup %133 }
  0xca   :  { %v64_v26 = vmul.f32 %v134_v25, %v62_v24 }
  0xcc   :  { %v66_v29 = vsel %vm65_vm1, %v62_v24, %v64_v26 }
  0xcd   :  { %v69_v31 = vsel %vm67_vm2, %v68_v28, %v66_v29 }
  0xce   :  { %v70_v32 = vadd.f32 1e-09, %v69_v31 }
  0xd0   :  { %v71_v33 = vsub.f32 2.0, %v70_v32 }
  0xd2   :  { %v72_v35 = vmax.f32 %v71_v33, 0.0 }
  0xd4   :  { %v77_v37 = vmul.f32 %v76_v34, %v72_v35 }
  0xd6   :  { %v78_v39 = vmul.f32 %v77_v37, %v72_v35 }
  0xd8   :  { %v79_v40 = vadd.f32 %v78_v39, %v74_v38 }
  0xda   :  { %v89_v41 = vsel %vm88_vm3, %v79_v40, 0.0 }
  0xdb   :  { %90 = vadd.xlane.f32.xlu1 %v89_v41 }
 0x168   :  { %v91_v43 = vpop.xlane.xlu1 %90 }
 0x169   :  { %v92_v44 = vrot.slane %v91_v43, 4 }
 0x16b   :  { %v93_v45 = vadd.f32 %v92_v44, %v91_v43 }
 0x16d   :  { %v94_v46 = vrot.slane %v93_v45, 2 }
 0x16f   :  { %v95_v47 = vadd.f32 %v94_v46, %v93_v45 }
 0x171   :  { %v96_v48 = vrot.slane %v95_v47, 1 }
 0x173   :  { %v97_v49 = vadd.f32 %v96_v48, %v95_v47 }
 0x175   :  { %124 = vpush %v97_v49 }
 0x1a6   :  { %s125_s2 = spop %124 }
 0x1a7   :  { %v99_v51 = vstv %s125_s2 }
 0x1a8   :  { %v100_v52 = vadd.f32 %v99_v51, %v87_v50 }
 0x1aa   :  { %102 = vst.msk [vmem:[#allocation5] sm:$0x1] %vm31_vm4, %v100_v52 }
 0x1b1   :  { %v106_v53 = vld [vmem:[#allocation5] sm:$0x1] }
 0x1b2   :  { %v107_v54 = vmul.f32 0.125, %v106_v53 }
 0x1b4   :  { %108 = vst.msk [vmem:[#allocation5] sm:$0x1] %vm31_vm4, %v107_v54 }
 0x1b5   :  { %168 = shalt.err (!%p165_p12)
}
 0x1b6   :  { %s169_s5 = scalar_lea.hbm %s242_s3, 16 }
 0x1b7   :  { %p170_p13 = scmp.ne.s32.totalorder %s242_s3, %s169_s5  ;;  %p173_p0 = scmp.lt.u32.totalorder %s169_s5, %s242_s3 }
 0x1b9   :  { %p175_p1 = pnand %p173_p0, %p170_p13 }
 0x1bb   :  { %178 = shalt.err (!%p175_p1)
}
 0x1bc   :  { %118 = dma.vmem_to_hbm [thread:$0]  %s116_s27, 16, %s242_s3, [#allocation4]  }
 0x1bd   :  { %181 = dma.done.wait [#allocation4], 16  }
 0x1be   :  { %182 = vsyncadd [#allocation4], 4294967280 }
 0x1bf   :  { %122 = vsyncpa [#allocation3], 1 }
 0x1c0   :  { %123 = vsyncpa [#allocation4], 1 }

</bundles_post_ra>
